<compile_context>
chip_gen: v6e
topology: v6e:2x2x1
jax: 0.10.0
libtpu: 0.0.40
codegen_flags: <defaults>
</compile_context>

<pallas_src>
import functools

import jax
import jax.numpy as jnp
import numpy as np
from jax import lax
from jax.experimental import pallas as pl
from jax.experimental.pallas import tpu as pltpu


def _round_up(x, m):
    return -(-x // m) * m


def _cdiv(a, b):
    return -(-a // b)


def _tile_vmem_bytes(tm, tk, d, bpe):
    """Conservative per-step VMEM footprint estimate (streamed-C layout)."""
    a_b = 2 * tm * max(d, 128) * bpe            # double-buffered A tile
    c_b = 2 * max(d, 8) * tk * bpe              # double-buffered C tile
    lab_b = 2 * tm * 128 * 4 + 2 * 8 * tk * 4   # lane/sublane padded labels
    out_b = 2 * tm * 128 * 4
    scratch_b = tm * 128 * 4
    interm_b = 8 * tm * tk * 4                  # live [tm,tk] f32 temporaries
    return a_b + c_b + lab_b + out_b + scratch_b + interm_b


def _tvmf_kernel(a_ref, c_ref, rlab_ref, clab_ref, out_ref, stats_ref, *,
                 kappa, a_coef, b_coef, c_coef, loss_scale, n_valid, tk,
                 resident_c, target_labels):
    """Row-block x col-block step of the online masked log-softmax.

    stats_ref is a single lane-dense (tm, 128) f32 scratch:
      col 0: running max  col 1: running exp-sum
      col 2: sum of positive-pair logits  col 3: positive-pair count
    """
    i = pl.program_id(0)
    j = pl.program_id(1)
    tm = a_ref.shape[0]

    @pl.when(j == 0)
    def _():
        stats_ref[...] = jnp.zeros_like(stats_ref)
        stats_ref[:, 0:1] = jnp.full((tm, 1), -jnp.inf, jnp.float32)

    # ---- cosine tile: lane-dense NN matmul on the MXU (bf16 in, f32 acc) ----
    if resident_c:
        col_start = pl.multiple_of(j * tk, tk)
        c = c_ref[:, pl.ds(col_start, tk)]          # C fully VMEM-resident
    else:
        c = c_ref[...]                               # streamed (d, tk) tile
    cos = jnp.dot(a_ref[...], c, preferred_element_type=jnp.float32)

    # ---- t-vMF similarity / temperature, constants folded ----
    # sim/T = ((1+k)*cos - k) / (1 + k*(1-cos)) / T + bias/T
    # EUP approx reciprocal + one Newton step (keeps the rtol=1e-4 check).
    denom = (1.0 + kappa) - kappa * cos
    r = pl.reciprocal(denom, approx=True)
    r = r * (2.0 - denom * r)
    logits = (a_coef * cos - b_coef) * r + c_coef

    same_label = rlab_ref[...] == clab_ref[...]      # [tm,1] vs [1,tk]
    m_prev = stats_ref[:, 0:1]

    row0 = i * tm
    col0 = j * tk
    on_diag = jnp.logical_and(row0 < col0 + tk, col0 < row0 + tm)
    has_pad = (col0 + tk) > n_valid
    needs_mask = jnp.logical_or(on_diag, has_pad)

    def _update(m_new, e, pos):
        alpha = jnp.exp(m_prev - m_new)
        stats_ref[:, 0:1] = m_new
        stats_ref[:, 1:2] = stats_ref[:, 1:2] * alpha + jnp.sum(
            e, axis=1, keepdims=True)
        stats_ref[:, 2:3] = stats_ref[:, 2:3] + jnp.sum(
            pos * logits, axis=1, keepdims=True)
        stats_ref[:, 3:4] = stats_ref[:, 3:4] + jnp.sum(
            pos, axis=1, keepdims=True)

    # Edge tiles: diagonal band and/or padded columns -> full mask build.
    @pl.when(needs_mask)
    def _():
        grow = row0 + lax.broadcasted_iota(jnp.int32, logits.shape, 0)
        gcol = col0 + lax.broadcasted_iota(jnp.int32, logits.shape, 1)
        valid = gcol < n_valid
        lmask = jnp.logical_and(valid, grow != gcol)
        # torch max is over the full valid row INCLUDING the diagonal.
        m_new = jnp.maximum(
            m_prev,
            jnp.max(jnp.where(valid, logits, -jnp.inf), axis=1, keepdims=True))
        e = jnp.exp(logits - m_new) * lmask.astype(jnp.float32)
        pos = jnp.logical_and(same_label, lmask).astype(jnp.float32)
        _update(m_new, e, pos)

    # Interior tiles: no diagonal, no padding -> no iotas / mask multiplies.
    @pl.when(jnp.logical_not(needs_mask))
    def _():
        m_new = jnp.maximum(m_prev, jnp.max(logits, axis=1, keepdims=True))
        e = jnp.exp(logits - m_new)
        pos = same_label.astype(jnp.float32)
        _update(m_new, e, pos)

    @pl.when(j == pl.num_programs(1) - 1)
    def _():
        m_i = stats_ref[:, 0:1]
        s_i = stats_ref[:, 1:2]
        p_i = stats_ref[:, 2:3]
        cnt = stats_ref[:, 3:4]
        cnt_c = jnp.where(cnt < 1e-6, 1.0, cnt)
        # sum_{pos j} (sim_ij - M_i - log(S_i + 1e-6)) / pos_i
        log_denom = m_i + jnp.log(s_i + 1e-6)
        mlpp = (p_i - cnt * log_denom) / cnt_c
        # target-class weight rebuilt from the row labels (no [N,1] input).
        rlab = rlab_ref[...]
        w = jnp.zeros_like(mlpp)
        for tc in target_labels:                      # static python loop
            w = w + (rlab == tc).astype(jnp.float32)
        out_ref[...] = (loss_scale * mlpp) * w


def tvmf_loss(features, labels, target_labels, *,
              temperature=0.07, contrast_mode='all', base_temperature=0.07,
              kappa=4.0, bias=0.0, reduction='mean',
              block_rows=256, block_cols=512, matmul_dtype=jnp.bfloat16,
              resident_c_bytes=4 * 1024 * 1024):
    assert target_labels is not None and len(target_labels) > 0, \
        'Target labels should be given as a list of integer'
    if contrast_mode != 'all':
        # TODO(synk): contrast_mode='one' (single anchor view) not wired up.
        raise ValueError('only contrast_mode="all" is implemented')
    if features.ndim < 3:
        raise ValueError('`features` needs to be [bsz, n_views, ...]')
    if labels is None:
        # TODO(synk): labels=None / explicit `mask=` (eye mask) path not wired up.
        raise ValueError('labels are required for this implementation')

    bsz, n_views = features.shape[0], features.shape[1]
    feat = features.reshape(bsz, n_views, -1).astype(jnp.float32)
    d = feat.shape[-1]
    n = n_views * bsz
    labels = labels.reshape(-1).astype(jnp.int32)
    if labels.shape[0] != bsz:
        raise ValueError('Num of labels does not match num of features')

    # torch.cat(torch.unbind(features, dim=1), dim=0) == view-major flatten.
    contrast = jnp.transpose(feat, (1, 0, 2)).reshape(n, d)

    # F.normalize(anchor, dim=1): per-row L2.  F.normalize(contrast.T, dim=1):
    # per-feature-coordinate L2 across the N samples (faithful to the source).
    a_feat = contrast / jnp.maximum(
        jnp.linalg.norm(contrast, axis=1, keepdims=True), 1e-12)
    c_feat = contrast / jnp.maximum(
        jnp.linalg.norm(contrast, axis=0, keepdims=True), 1e-12)

    lab_rep = jnp.tile(labels, n_views)                       # [N] labels

    # --- tile selection & independent row/col padding ------------------------
    bpe = jnp.dtype(matmul_dtype).itemsize
    vmem_budget = 48 * 1024 * 1024                 # safe under v7x 64 MiB VMEM

    tm = max(8, min(_round_up(block_rows, 8), _round_up(n, 8)))
    if n > 8 and _cdiv(n, tm) < 2:                 # >=2 row blocks for v7x 2-TC
        tm = max(8, _round_up(_cdiv(n, 2), 8))

    tk = _round_up(max(1, min(block_cols, n)), 128)   # lane axis: x128
    while tk > 128 and _tile_vmem_bytes(tm, tk, d, bpe) > vmem_budget:
        tk = max(128, _round_up(tk // 2, 128))
    while tm > 8 and _tile_vmem_bytes(tm, tk, d, bpe) > vmem_budget:
        tm = max(8, _round_up(tm // 2, 8))

    n_pad_rows = _round_up(n, tm)
    n_pad_cols = _round_up(n, tk)
    grid = (n_pad_rows // tm, n_pad_cols // tk)

    # Keep the whole (transposed, lane-dense) contrast matrix VMEM-resident
    # when it is small and would otherwise be re-streamed once per row block.
    resident_c = bool(
        grid[1] > 1 and grid[0] > 1
        and 2 * d * n_pad_cols * bpe <= resident_c_bytes
        and _tile_vmem_bytes(tm, tk, d, bpe) + 2 * d * n_pad_cols * bpe
        <= vmem_budget)

    est = _tile_vmem_bytes(tm, tk, d, bpe) + (
        2 * d * n_pad_cols * bpe if resident_c else 0)
    vmem_limit = int(min(max(2 * est, 32 * 1024 * 1024), 64 * 1024 * 1024))

    sentinel = jnp.iinfo(jnp.int32).min
    a_p = jnp.pad(a_feat, ((0, n_pad_rows - n), (0, 0))).astype(matmul_dtype)
    c_t = jnp.pad(c_feat.T, ((0, 0), (0, n_pad_cols - n))).astype(matmul_dtype)
    row_lab = jnp.pad(lab_rep, (0, n_pad_rows - n),
                      constant_values=sentinel)[:, None]        # [Nr_pad, 1]
    col_lab = jnp.pad(lab_rep, (0, n_pad_cols - n),
                      constant_values=sentinel)[None, :]        # [1, Nc_pad]

    inv_temp = 1.0 / float(temperature)
    kernel = functools.partial(
        _tvmf_kernel,
        kappa=float(kappa),
        a_coef=(1.0 + float(kappa)) * inv_temp,
        b_coef=float(kappa) * inv_temp,
        c_coef=float(bias) * inv_temp,
        loss_scale=-(float(temperature) / float(base_temperature)),
        n_valid=n, tk=tk, resident_c=resident_c,
        target_labels=tuple(int(t) for t in target_labels))

    if resident_c:
        c_spec = pl.BlockSpec((d, n_pad_cols), lambda i, j: (0, 0))
    else:
        c_spec = pl.BlockSpec((d, tk), lambda i, j: (0, j))

    per_row = pl.pallas_call(
        kernel,
        out_shape=jax.ShapeDtypeStruct((n_pad_rows, 1), jnp.float32),
        grid_spec=pltpu.PrefetchScalarGridSpec(
            num_scalar_prefetch=0,
            grid=grid,
            in_specs=[
                pl.BlockSpec((tm, d), lambda i, j: (i, 0)),   # anchor rows
                c_spec,                                        # contrast [d, .]
                pl.BlockSpec((tm, 1), lambda i, j: (i, 0)),   # row labels
                pl.BlockSpec((1, tk), lambda i, j: (0, j)),   # col labels
            ],
            out_specs=pl.BlockSpec((tm, 1), lambda i, j: (i, 0)),
            scratch_shapes=[pltpu.VMEM((tm, 128), jnp.float32)],
        ),
        compiler_params=pltpu.CompilerParams(
            dimension_semantics=("parallel", "arbitrary"),
            vmem_limit_bytes=vmem_limit),
    )(a_p, c_t, row_lab, col_lab)

    loss_rows = per_row[:n, 0]                    # [N] weighted per-row loss
    if reduction == 'mean':
        return jnp.sum(loss_rows) / n
    elif reduction == 'none':
        return loss_rows.reshape(n_views, bsz).mean(axis=0)
    raise ValueError(f'loss reduction not supported: {reduction}')


def _tvmf_loss_ref(features, labels, target_labels, *, temperature=0.07,
                   base_temperature=0.07, kappa=4.0, bias=0.0,
                   reduction='mean', matmul_dtype=jnp.bfloat16):
    """Pure-JAX reference mirroring the PyTorch forward (contrast_mode='all')."""
    bsz, n_views = features.shape[0], features.shape[1]
    feat = features.reshape(bsz, n_views, -1).astype(jnp.float32)
    n = n_views * bsz
    cf = jnp.transpose(feat, (1, 0, 2)).reshape(n, -1)
    a = cf / jnp.maximum(jnp.linalg.norm(cf, axis=1, keepdims=True), 1e-12)
    c = cf / jnp.maximum(jnp.linalg.norm(cf, axis=0, keepdims=True), 1e-12)
    cos = jnp.dot(a.astype(matmul_dtype), c.astype(matmul_dtype).T,
                  preferred_element_type=jnp.float32)
    sim = ((1.0 + cos) / (1.0 + kappa * (1.0 - cos)) - 1.0 + bias) / temperature
    logits = sim - jnp.max(sim, axis=1, keepdims=True)
    logits_mask = 1.0 - jnp.eye(n, dtype=jnp.float32)
    label_mask = (labels[:, None] == labels[None, :]).astype(jnp.float32)
    mask = jnp.tile(label_mask, (n_views, n_views)) * logits_mask
    exp_logits = jnp.exp(logits) * logits_mask
    log_prob = logits - jnp.log(exp_logits.sum(1, keepdims=True) + 1e-6)
    pos = mask.sum(1)
    pos = jnp.where(pos < 1e-6, 1.0, pos)
    mlpp = (mask * log_prob).sum(1) / pos
    loss = -(temperature / base_temperature) * mlpp
    curr = jnp.zeros((bsz,), jnp.float32)
    for tc in target_labels:
        curr = curr + (labels == tc).astype(jnp.float32)
    loss = curr[None, :] * loss.reshape(n_views, bsz)
    if reduction == 'mean':
        return loss.mean()
    return loss.mean(axis=0)


if __name__ == "__main__":
    key = jax.random.PRNGKey(0)
    k1, k2, k3, k4 = jax.random.split(key, 4)

    # Case 1: tiny shape -- 2 row blocks, single (padded) column block.
    bsz, n_views, feat_dim = 8, 2, 32
    features = jax.random.normal(k1, (bsz, n_views, feat_dim), jnp.float32)
    labels = jax.random.randint(k2, (bsz,), 0, 4, jnp.int32)
    target_labels = [0, 1]
    loss = tvmf_loss(features, labels, target_labels, block_rows=8)
    loss = jax.block_until_ready(loss)
    ref = _tvmf_loss_ref(features, labels, target_labels)
    np.testing.assert_allclose(np.asarray(loss), np.asarray(ref),
                               rtol=1e-4, atol=1e-5)

    # Case 2: multi row/col blocks -> online softmax, interior "clean" tiles,
    # row/col padding and the resident-C (full-VMEM contrast) path.
    bsz2, n_views2, feat_dim2 = 72, 2, 32
    features2 = jax.random.normal(k3, (bsz2, n_views2, feat_dim2), jnp.float32)
    labels2 = jax.random.randint(k4, (bsz2,), 0, 5, jnp.int32)
    target_labels2 = [0, 2]
    loss2 = tvmf_loss(features2, labels2, target_labels2,
                      block_rows=64, block_cols=128)
    loss2 = jax.block_until_ready(loss2)
    ref2 = _tvmf_loss_ref(features2, labels2, target_labels2)
    np.testing.assert_allclose(np.asarray(loss2), np.asarray(ref2),
                               rtol=1e-4, atol=1e-5)

    # Case 3: same shape, but force the streamed (non-resident) C path.
    loss3 = tvmf_loss(features2, labels2, target_labels2,
                      block_rows=64, block_cols=128, resident_c_bytes=0)
    loss3 = jax.block_until_ready(loss3)
    np.testing.assert_allclose(np.asarray(loss3), np.asarray(ref2),
                               rtol=1e-4, atol=1e-5)

    print("KERNEL_OK")
</pallas_src>

<mosaic_0001>
module attributes {stable_mosaic.version = 11 : i64} {
  func.func @_tvmf_kernel(%arg0: i32, %arg1: i32, %arg2: memref<8x32xbf16, #tpu.memory_space<vmem>>, %arg3: memref<32x128xbf16, #tpu.memory_space<vmem>>, %arg4: memref<8x1xi32, #tpu.memory_space<vmem>>, %arg5: memref<1x128xi32, #tpu.memory_space<vmem>>, %arg6: memref<8x1xf32, #tpu.memory_space<vmem>>, %arg7: memref<8x128xf32, #tpu.memory_space<vmem>>) attributes {dimension_semantics = [#tpu.dimension_semantics<parallel>, #tpu.dimension_semantics<arbitrary>], iteration_bounds = array<i64: 2, 1>, scalar_prefetch = 0 : i64, scratch_operands = 1 : i64, tpu.core_type = #tpu.core_type<tc>, window_params = [{transform_indices = @transform_0, window_bounds = array<i64: 8, 32>}, {transform_indices = @transform_1, window_bounds = array<i64: 32, 128>}, {transform_indices = @transform_2, window_bounds = array<i64: 8, 1>}, {transform_indices = @transform_3, window_bounds = array<i64: 1, 128>}, {transform_indices = @transform_4, window_bounds = array<i64: 8, 1>}]} {
    %c0_i32 = arith.constant 0 : i32
    %0 = arith.cmpi eq, %arg1, %c0_i32 : i32
    %1 = arith.extui %0 : i1 to i32
    %c0_i32_0 = arith.constant 0 : i32
    %2 = arith.cmpi ne, %1, %c0_i32_0 : i32
    scf.if %2 {
      %cst_23 = arith.constant 0.000000e+00 : f32
      %46 = vector.broadcast %cst_23 : f32 to vector<8x128xf32>
      %c0_24 = arith.constant 0 : index
      %c0_25 = arith.constant 0 : index
      %47 = vector.load %arg7[%c0_24, %c0_25] : memref<8x128xf32, #tpu.memory_space<vmem>>, vector<8x128xf32>
      tpu.vector_store %arg7[%c0_24, %c0_25], %46 {strides = array<i32>} : memref<8x128xf32, #tpu.memory_space<vmem>>, vector<8x128xf32>,
      %cst_26 = arith.constant 0xFF800000 : f32
      %48 = vector.broadcast %cst_26 : f32 to vector<8x1xf32>
      %c0_27 = arith.constant 0 : index
      %c0_28 = arith.constant 0 : index
      %49 = vector.load %arg7[%c0_27, %c0_28] : memref<8x128xf32, #tpu.memory_space<vmem>>, vector<8x1xf32>
      tpu.vector_store %arg7[%c0_27, %c0_28], %48 {strides = array<i32>} : memref<8x128xf32, #tpu.memory_space<vmem>>, vector<8x1xf32>,
    } else {
    }
    %c0 = arith.constant 0 : index
    %c0_1 = arith.constant 0 : index
    %3 = vector.load %arg3[%c0, %c0_1] : memref<32x128xbf16, #tpu.memory_space<vmem>>, vector<32x128xbf16>
    %c0_2 = arith.constant 0 : index
    %c0_3 = arith.constant 0 : index
    %4 = vector.load %arg2[%c0_2, %c0_3] : memref<8x32xbf16, #tpu.memory_space<vmem>>, vector<8x32xbf16>
    %cst = arith.constant dense<0.000000e+00> : vector<8x128xf32>
    %5 = tpu.matmul %4, %3, %cst {dimension_numbers = #tpu.dot_dimension_numbers<[1], [0], [0], [1], [0, 0, 1, 1], [], []>} : vector<8x32xbf16>, vector<32x128xbf16>, vector<8x128xf32> -> vector<8x128xf32>
    %cst_4 = arith.constant 4.000000e+00 : f32
    %6 = vector.broadcast %cst_4 : f32 to vector<8x128xf32>
    %7 = arith.mulf %6, %5 : vector<8x128xf32>
    %cst_5 = arith.constant 5.000000e+00 : f32
    %8 = vector.broadcast %cst_5 : f32 to vector<8x128xf32>
    %9 = arith.subf %8, %7 : vector<8x128xf32>
    %10 = tpu.reciprocal %9 {approx = true} : vector<8x128xf32> -> vector<8x128xf32>
    %11 = arith.mulf %9, %10 : vector<8x128xf32>
    %cst_6 = arith.constant 2.000000e+00 : f32
    %12 = vector.broadcast %cst_6 : f32 to vector<8x128xf32>
    %13 = arith.subf %12, %11 : vector<8x128xf32>
    %14 = arith.mulf %10, %13 : vector<8x128xf32>
    %cst_7 = arith.constant 71.4285736 : f32
    %15 = vector.broadcast %cst_7 : f32 to vector<8x128xf32>
    %16 = arith.mulf %15, %5 : vector<8x128xf32>
    %cst_8 = arith.constant 57.1428566 : f32
    %17 = vector.broadcast %cst_8 : f32 to vector<8x128xf32>
    %18 = arith.subf %16, %17 : vector<8x128xf32>
    %19 = arith.mulf %18, %14 : vector<8x128xf32>
    %cst_9 = arith.constant 0.000000e+00 : f32
    %20 = vector.broadcast %cst_9 : f32 to vector<8x128xf32>
    %21 = arith.addf %19, %20 : vector<8x128xf32>
    %c0_10 = arith.constant 0 : index
    %c0_11 = arith.constant 0 : index
    %22 = vector.load %arg4[%c0_10, %c0_11] : memref<8x1xi32, #tpu.memory_space<vmem>>, vector<8x1xi32>
    %c0_12 = arith.constant 0 : index
    %c0_13 = arith.constant 0 : index
    %23 = vector.load %arg5[%c0_12, %c0_13] : memref<1x128xi32, #tpu.memory_space<vmem>>, vector<1x128xi32>
    %24 = vector.broadcast %22 : vector<8x1xi32> to vector<8x128xi32>
    %25 = vector.broadcast %23 : vector<1x128xi32> to vector<8x128xi32>
    %26 = arith.cmpi eq, %24, %25 : vector<8x128xi32>
    %c0_14 = arith.constant 0 : index
    %c0_15 = arith.constant 0 : index
    %27 = vector.load %arg7[%c0_14, %c0_15] : memref<8x128xf32, #tpu.memory_space<vmem>>, vector<8x1xf32>
    %c8_i32 = arith.constant 8 : i32
    %28 = arith.muli %arg0, %c8_i32 : i32
    %c128_i32 = arith.constant 128 : i32
    %29 = arith.muli %arg1, %c128_i32 : i32
    %c128_i32_16 = arith.constant 128 : i32
    %30 = arith.addi %29, %c128_i32_16 : i32
    %31 = arith.cmpi slt, %28, %30 : i32
    %c8_i32_17 = arith.constant 8 : i32
    %32 = arith.addi %28, %c8_i32_17 : i32
    %33 = arith.cmpi slt, %29, %32 : i32
    %34 = arith.andi %31, %33 : i1
    %c128_i32_18 = arith.constant 128 : i32
    %35 = arith.addi %29, %c128_i32_18 : i32
    %c16_i32 = arith.constant 16 : i32
    %36 = arith.cmpi sgt, %35, %c16_i32 : i32
    %37 = arith.ori %34, %36 : i1
    %38 = arith.extui %37 : i1 to i32
    %c0_i32_19 = arith.constant 0 : i32
    %39 = arith.cmpi ne, %38, %c0_i32_19 : i32
    scf.if %39 {
      %46 = tpu.iota {dimensions = array<i32: 0>} : vector<8x128xi32>
      %47 = vector.broadcast %28 : i32 to vector<8x128xi32>
      %48 = arith.addi %47, %46 : vector<8x128xi32>
      %49 = tpu.iota {dimensions = array<i32: 1>} : vector<8x128xi32>
      %50 = vector.broadcast %29 : i32 to vector<8x128xi32>
      %51 = arith.addi %50, %49 : vector<8x128xi32>
      %c16_i32_23 = arith.constant 16 : i32
      %52 = vector.broadcast %c16_i32_23 : i32 to vector<8x128xi32>
      %53 = arith.cmpi slt, %51, %52 : vector<8x128xi32>
      %54 = arith.cmpi ne, %48, %51 : vector<8x128xi32>
      %55 = arith.andi %53, %54 : vector<8x128xi1>
      %cst_24 = arith.constant 0xFF800000 : f32
      %56 = vector.broadcast %cst_24 : f32 to vector<8x128xf32>
      %57 = arith.select %53, %21, %56 : vector<8x128xi1>, vector<8x128xf32>
      %cst_25 = arith.constant dense<0xFF800000> : vector<8xf32>
      %58 = vector.multi_reduction <maximumf>, %57, %cst_25 [1] : vector<8x128xf32> to vector<8xf32>
      %59 = vector.shape_cast %58 : vector<8xf32> to vector<8x1xf32>
      %60 = arith.maximumf %27, %59 : vector<8x1xf32>
      %61 = vector.broadcast %60 : vector<8x1xf32> to vector<8x128xf32>
      %62 = arith.subf %21, %61 : vector<8x128xf32>
      %63 = math.exp %62 : vector<8x128xf32>
      %64 = arith.extui %55 : vector<8x128xi1> to vector<8x128xi32>
      %65 = arith.sitofp %64 : vector<8x128xi32> to vector<8x128xf32>
      %66 = arith.mulf %63, %65 : vector<8x128xf32>
      %67 = arith.andi %26, %55 : vector<8x128xi1>
      %68 = arith.extui %67 : vector<8x128xi1> to vector<8x128xi32>
      %69 = arith.sitofp %68 : vector<8x128xi32> to vector<8x128xf32>
      %70 = arith.subf %27, %60 : vector<8x1xf32>
      %71 = math.exp %70 : vector<8x1xf32>
      %c0_26 = arith.constant 0 : index
      %c0_27 = arith.constant 0 : index
      %72 = vector.load %arg7[%c0_26, %c0_27] : memref<8x128xf32, #tpu.memory_space<vmem>>, vector<8x1xf32>
      tpu.vector_store %arg7[%c0_26, %c0_27], %60 {strides = array<i32>} : memref<8x128xf32, #tpu.memory_space<vmem>>, vector<8x1xf32>,
      %c0_28 = arith.constant 0 : index
      %c1 = arith.constant 1 : index
      %73 = vector.load %arg7[%c0_28, %c1] : memref<8x128xf32, #tpu.memory_space<vmem>>, vector<8x1xf32>
      %74 = arith.mulf %73, %71 : vector<8x1xf32>
      %cst_29 = arith.constant dense<0.000000e+00> : vector<8xf32>
      %75 = vector.multi_reduction <add>, %66, %cst_29 [1] : vector<8x128xf32> to vector<8xf32>
      %76 = vector.shape_cast %75 : vector<8xf32> to vector<8x1xf32>
      %77 = arith.addf %74, %76 : vector<8x1xf32>
      %c0_30 = arith.constant 0 : index
      %c1_31 = arith.constant 1 : index
      %78 = vector.load %arg7[%c0_30, %c1_31] : memref<8x128xf32, #tpu.memory_space<vmem>>, vector<8x1xf32>
      tpu.vector_store %arg7[%c0_30, %c1_31], %77 {strides = array<i32>} : memref<8x128xf32, #tpu.memory_space<vmem>>, vector<8x1xf32>,
      %c0_32 = arith.constant 0 : index
      %c2 = arith.constant 2 : index
      %79 = vector.load %arg7[%c0_32, %c2] : memref<8x128xf32, #tpu.memory_space<vmem>>, vector<8x1xf32>
      %80 = arith.mulf %69, %21 : vector<8x128xf32>
      %cst_33 = arith.constant dense<0.000000e+00> : vector<8xf32>
      %81 = vector.multi_reduction <add>, %80, %cst_33 [1] : vector<8x128xf32> to vector<8xf32>
      %82 = vector.shape_cast %81 : vector<8xf32> to vector<8x1xf32>
      %83 = arith.addf %79, %82 : vector<8x1xf32>
      %c0_34 = arith.constant 0 : index
      %c2_35 = arith.constant 2 : index
      %84 = vector.load %arg7[%c0_34, %c2_35] : memref<8x128xf32, #tpu.memory_space<vmem>>, vector<8x1xf32>
      tpu.vector_store %arg7[%c0_34, %c2_35], %83 {strides = array<i32>} : memref<8x128xf32, #tpu.memory_space<vmem>>, vector<8x1xf32>,
      %c0_36 = arith.constant 0 : index
      %c3 = arith.constant 3 : index
      %85 = vector.load %arg7[%c0_36, %c3] : memref<8x128xf32, #tpu.memory_space<vmem>>, vector<8x1xf32>
      %cst_37 = arith.constant dense<0.000000e+00> : vector<8xf32>
      %86 = vector.multi_reduction <add>, %69, %cst_37 [1] : vector<8x128xf32> to vector<8xf32>
      %87 = vector.shape_cast %86 : vector<8xf32> to vector<8x1xf32>
      %88 = arith.addf %85, %87 : vector<8x1xf32>
      %c0_38 = arith.constant 0 : index
      %c3_39 = arith.constant 3 : index
      %89 = vector.load %arg7[%c0_38, %c3_39] : memref<8x128xf32, #tpu.memory_space<vmem>>, vector<8x1xf32>
      tpu.vector_store %arg7[%c0_38, %c3_39], %88 {strides = array<i32>} : memref<8x128xf32, #tpu.memory_space<vmem>>, vector<8x1xf32>,
    } else {
    }
    %true = arith.constant true
    %40 = arith.xori %37, %true : i1
    %41 = arith.extui %40 : i1 to i32
    %c0_i32_20 = arith.constant 0 : i32
    %42 = arith.cmpi ne, %41, %c0_i32_20 : i32
    scf.if %42 {
      %cst_23 = arith.constant dense<0xFF800000> : vector<8xf32>
      %46 = vector.multi_reduction <maximumf>, %21, %cst_23 [1] : vector<8x128xf32> to vector<8xf32>
      %47 = vector.shape_cast %46 : vector<8xf32> to vector<8x1xf32>
      %48 = arith.maximumf %27, %47 : vector<8x1xf32>
      %49 = vector.broadcast %48 : vector<8x1xf32> to vector<8x128xf32>
      %50 = arith.subf %21, %49 : vector<8x128xf32>
      %51 = math.exp %50 : vector<8x128xf32>
      %52 = arith.extui %26 : vector<8x128xi1> to vector<8x128xi32>
      %53 = arith.sitofp %52 : vector<8x128xi32> to vector<8x128xf32>
      %54 = arith.subf %27, %48 : vector<8x1xf32>
      %55 = math.exp %54 : vector<8x1xf32>
      %c0_24 = arith.constant 0 : index
      %c0_25 = arith.constant 0 : index
      %56 = vector.load %arg7[%c0_24, %c0_25] : memref<8x128xf32, #tpu.memory_space<vmem>>, vector<8x1xf32>
      tpu.vector_store %arg7[%c0_24, %c0_25], %48 {strides = array<i32>} : memref<8x128xf32, #tpu.memory_space<vmem>>, vector<8x1xf32>,
      %c0_26 = arith.constant 0 : index
      %c1 = arith.constant 1 : index
      %57 = vector.load %arg7[%c0_26, %c1] : memref<8x128xf32, #tpu.memory_space<vmem>>, vector<8x1xf32>
      %58 = arith.mulf %57, %55 : vector<8x1xf32>
      %cst_27 = arith.constant dense<0.000000e+00> : vector<8xf32>
      %59 = vector.multi_reduction <add>, %51, %cst_27 [1] : vector<8x128xf32> to vector<8xf32>
      %60 = vector.shape_cast %59 : vector<8xf32> to vector<8x1xf32>
      %61 = arith.addf %58, %60 : vector<8x1xf32>
      %c0_28 = arith.constant 0 : index
      %c1_29 = arith.constant 1 : index
      %62 = vector.load %arg7[%c0_28, %c1_29] : memref<8x128xf32, #tpu.memory_space<vmem>>, vector<8x1xf32>
      tpu.vector_store %arg7[%c0_28, %c1_29], %61 {strides = array<i32>} : memref<8x128xf32, #tpu.memory_space<vmem>>, vector<8x1xf32>,
      %c0_30 = arith.constant 0 : index
      %c2 = arith.constant 2 : index
      %63 = vector.load %arg7[%c0_30, %c2] : memref<8x128xf32, #tpu.memory_space<vmem>>, vector<8x1xf32>
      %64 = arith.mulf %53, %21 : vector<8x128xf32>
      %cst_31 = arith.constant dense<0.000000e+00> : vector<8xf32>
      %65 = vector.multi_reduction <add>, %64, %cst_31 [1] : vector<8x128xf32> to vector<8xf32>
      %66 = vector.shape_cast %65 : vector<8xf32> to vector<8x1xf32>
      %67 = arith.addf %63, %66 : vector<8x1xf32>
      %c0_32 = arith.constant 0 : index
      %c2_33 = arith.constant 2 : index
      %68 = vector.load %arg7[%c0_32, %c2_33] : memref<8x128xf32, #tpu.memory_space<vmem>>, vector<8x1xf32>
      tpu.vector_store %arg7[%c0_32, %c2_33], %67 {strides = array<i32>} : memref<8x128xf32, #tpu.memory_space<vmem>>, vector<8x1xf32>,
      %c0_34 = arith.constant 0 : index
      %c3 = arith.constant 3 : index
      %69 = vector.load %arg7[%c0_34, %c3] : memref<8x128xf32, #tpu.memory_space<vmem>>, vector<8x1xf32>
      %cst_35 = arith.constant dense<0.000000e+00> : vector<8xf32>
      %70 = vector.multi_reduction <add>, %53, %cst_35 [1] : vector<8x128xf32> to vector<8xf32>
      %71 = vector.shape_cast %70 : vector<8xf32> to vector<8x1xf32>
      %72 = arith.addf %69, %71 : vector<8x1xf32>
      %c0_36 = arith.constant 0 : index
      %c3_37 = arith.constant 3 : index
      %73 = vector.load %arg7[%c0_36, %c3_37] : memref<8x128xf32, #tpu.memory_space<vmem>>, vector<8x1xf32>
      tpu.vector_store %arg7[%c0_36, %c3_37], %72 {strides = array<i32>} : memref<8x128xf32, #tpu.memory_space<vmem>>, vector<8x1xf32>,
    } else {
    }
    %c0_i32_21 = arith.constant 0 : i32
    %43 = arith.cmpi eq, %arg1, %c0_i32_21 : i32
    %44 = arith.extui %43 : i1 to i32
    %c0_i32_22 = arith.constant 0 : i32
    %45 = arith.cmpi ne, %44, %c0_i32_22 : i32
    scf.if %45 {
      %c0_23 = arith.constant 0 : index
      %c0_24 = arith.constant 0 : index
      %46 = vector.load %arg7[%c0_23, %c0_24] : memref<8x128xf32, #tpu.memory_space<vmem>>, vector<8x1xf32>
      %c0_25 = arith.constant 0 : index
      %c1 = arith.constant 1 : index
      %47 = vector.load %arg7[%c0_25, %c1] : memref<8x128xf32, #tpu.memory_space<vmem>>, vector<8x1xf32>
      %c0_26 = arith.constant 0 : index
      %c2 = arith.constant 2 : index
      %48 = vector.load %arg7[%c0_26, %c2] : memref<8x128xf32, #tpu.memory_space<vmem>>, vector<8x1xf32>
      %c0_27 = arith.constant 0 : index
      %c3 = arith.constant 3 : index
      %49 = vector.load %arg7[%c0_27, %c3] : memref<8x128xf32, #tpu.memory_space<vmem>>, vector<8x1xf32>
      %cst_28 = arith.constant 9.99999997E-7 : f32
      %50 = vector.broadcast %cst_28 : f32 to vector<8x1xf32>
      %51 = arith.cmpf olt, %49, %50 : vector<8x1xf32>
      %cst_29 = arith.constant 1.000000e+00 : f32
      %52 = vector.broadcast %cst_29 : f32 to vector<8x1xf32>
      %53 = arith.select %51, %52, %49 : vector<8x1xi1>, vector<8x1xf32>
      %cst_30 = arith.constant 9.99999997E-7 : f32
      %54 = vector.broadcast %cst_30 : f32 to vector<8x1xf32>
      %55 = arith.addf %47, %54 : vector<8x1xf32>
      %56 = math.log %55 : vector<8x1xf32>
      %57 = arith.addf %46, %56 : vector<8x1xf32>
      %58 = arith.mulf %49, %57 : vector<8x1xf32>
      %59 = arith.subf %48, %58 : vector<8x1xf32>
      %60 = arith.divf %59, %53 : vector<8x1xf32>
      %c0_31 = arith.constant 0 : index
      %c0_32 = arith.constant 0 : index
      %61 = vector.load %arg4[%c0_31, %c0_32] : memref<8x1xi32, #tpu.memory_space<vmem>>, vector<8x1xi32>
      %cst_33 = arith.constant 0.000000e+00 : f32
      %62 = vector.broadcast %cst_33 : f32 to vector<8x1xf32>
      %c0_i32_34 = arith.constant 0 : i32
      %63 = vector.broadcast %c0_i32_34 : i32 to vector<8x1xi32>
      %64 = arith.cmpi eq, %61, %63 : vector<8x1xi32>
      %65 = arith.extui %64 : vector<8x1xi1> to vector<8x1xi32>
      %66 = arith.sitofp %65 : vector<8x1xi32> to vector<8x1xf32>
      %67 = arith.addf %62, %66 : vector<8x1xf32>
      %c1_i32 = arith.constant 1 : i32
      %68 = vector.broadcast %c1_i32 : i32 to vector<8x1xi32>
      %69 = arith.cmpi eq, %61, %68 : vector<8x1xi32>
      %70 = arith.extui %69 : vector<8x1xi1> to vector<8x1xi32>
      %71 = arith.sitofp %70 : vector<8x1xi32> to vector<8x1xf32>
      %72 = arith.addf %67, %71 : vector<8x1xf32>
      %cst_35 = arith.constant -1.000000e+00 : f32
      %73 = vector.broadcast %cst_35 : f32 to vector<8x1xf32>
      %74 = arith.mulf %73, %60 : vector<8x1xf32>
      %75 = arith.mulf %74, %72 : vector<8x1xf32>
      %c0_36 = arith.constant 0 : index
      %c0_37 = arith.constant 0 : index
      %76 = vector.load %arg6[%c0_36, %c0_37] : memref<8x1xf32, #tpu.memory_space<vmem>>, vector<8x1xf32>
      tpu.vector_store %arg6[%c0_36, %c0_37], %75 {strides = array<i32>} : memref<8x1xf32, #tpu.memory_space<vmem>>, vector<8x1xf32>,
    } else {
    }
    return
  }
  func.func @transform_0(%arg0: i32, %arg1: i32) -> (i32, i32) {
    %c0_i32 = arith.constant 0 : i32
    %c0_i32_0 = arith.constant 0 : i32
    return %arg0, %c0_i32 : i32, i32
  }
  func.func @transform_1(%arg0: i32, %arg1: i32) -> (i32, i32) {
    %c0_i32 = arith.constant 0 : i32
    %c0_i32_0 = arith.constant 0 : i32
    return %c0_i32, %arg1 : i32, i32
  }
  func.func @transform_2(%arg0: i32, %arg1: i32) -> (i32, i32) {
    %c0_i32 = arith.constant 0 : i32
    %c0_i32_0 = arith.constant 0 : i32
    return %arg0, %c0_i32 : i32, i32
  }
  func.func @transform_3(%arg0: i32, %arg1: i32) -> (i32, i32) {
    %c0_i32 = arith.constant 0 : i32
    %c0_i32_0 = arith.constant 0 : i32
    return %c0_i32, %arg1 : i32, i32
  }
  func.func @transform_4(%arg0: i32, %arg1: i32) -> (i32, i32) {
    %c0_i32 = arith.constant 0 : i32
    %c0_i32_0 = arith.constant 0 : i32
    return %arg0, %c0_i32 : i32, i32
  }
}

</mosaic_0001>

<bundles_post_ra>
// kernel: tpu_custom_call.1
= control target key start
LH: loop header
LB: loop body
LE: loop exit
PB: predicated region body
PF: predicated region fallthrough
CT: control target
= control target key end

     0   :  { %9 = vsyncpa [#allocation4], 0  ;;  %s1009_s0 = inlined_call_operand.hbm [shape: bf16[16,32], index: 0, kind: input, shape index: {}]   ;;  %s1010_s1 = inlined_call_operand.vmem [shape: bf16[32,128], index: 1, kind: input, shape index: {}]   ;;  %s1011_s2 = inlined_call_operand.vmem [shape: s32[16,1], index: 2, kind: input, shape index: {}]   ;;  %s1012_s3 = inlined_call_operand.vmem [shape: s32[1,128], index: 3, kind: input, shape index: {}]   ;;  %s1013_s4 = inlined_call_operand.vmem [shape: f32[16,1], index: 4, kind: output, shape index: {}]  }
   0x1   :  { %11 = vsyncpa [#allocation4 + $0x1], 0  ;;  %s872_s15 = smov 0   ;;  %s874_s16 = smov 0  }
   0x2   :  { %s876_s17 = smov 0   ;;  %s878_s18 = smov 0  }
   0x3   :  { %s880_s19 = smov 0   ;;  %s882_s20 = smov 0  }
   0x4 LB: > { %s642_s21 = sadd.s32 4294967295, %s835_s20   ;;  %s29_s22 = sadd.s32 1, %s831_s19  ;;  %s835_s20 = sphi %s882_s20, %s17_s20   ;;  %s831_s19 = sphi %s880_s19, %s1021_s19   ;;  %s827_s18 = sphi %s878_s18, %s1020_s18   ;;  %s823_s17 = sphi %s876_s17, %s1019_s17   ;;  %s819_s16 = sphi %s874_s16, %s1018_s16   ;;  %s815_s15 = sphi %s872_s15, %s1017_s15  }
   0x5   : > { %p31_p0 = scmp.ge.s32.totalorder %s29_s22, 2  ;;  %s36_s23 = sadd.s32 1, %s823_s17 }
   0x6   : > { %p43_p1 = scmp.ne.s32.totalorder %s823_s17, %s819_s16  ;;  %p44_p2 = scmp.eq.s32.totalorder %s835_s20, 0 }
   0x7   : > { %s1023_s22 = smov (%p31_p0, %s29_s22), 0  ;;  %p49_p4 = scmp.ne.s32.totalorder %s819_s16, %s815_s15 }
   0x8   : > { %p908_p3 = por %p44_p2, %p43_p1  ;;  %s33_s25 = ssub.s32 %s831_s19, %s1023_s22 }
   0x9   : > { %p50_p5 = scmp.eq.s32.totalorder %s642_s21, 0  ;;  %p34_p6 = scmp.eq.s32.totalorder %s33_s25, 0 }
   0xa   : > { %p685_p8 = scmp.lt.s32.totalorder %s835_s20, 2  ;;  %s190_s28 = sand.u32 1, %s823_s17  }
   0xb   : > { %p915_p7 = por %p50_p5, %p49_p4  ;;  %s649_s29 = sshll.u32 %s831_s19, 6 }
   0xc   : > { %s921_s27 = scalar_select %p34_p6, %s823_s17, %s36_s23  }
   0xd   : > { %s648_s30 = sshll.u32 %s190_s28, 2  ;;  %s199_s7 = scalar_lea.hbm %s1009_s0, %s649_s29 }
   0xe   : > { %s194_s8 = scalar_lea.vmem [#allocation3], %s648_s30  ;;  %p930_p9 = pnand %p685_p8, %p908_p3 }
   0xf   : > { %s201_s9 = sshll.u32 %s194_s8, 4  ;;  %p650_p10 = scmp.ge.s32.totalorder %s835_s20, 1  ;;  %s202_s9 = int_to_ptr.vmem [resolvable:$true] %s201_s9 }
  0x10   : > { %p213_p11 = scmp.lt.s32.totalorder %s835_s20, 3  ;;  %s191_s11 = scalar_lea.sflag [#allocation4], %s190_s28 }
  0x11   : > { %p759_p12 = pneg %p930_p9  ;;  %s770_s12 = scalar_lea.vmem %s202_s9, 64 }
  0x12   : > { %p771_p13 = scmp.ne.s32.totalorder %s202_s9, %s770_s12  ;;  %s837_s13 = smov [#allocation3]  }
  0x13   : > { %s775_s14 = sshll.u32 %s837_s13, 4  ;;  %s776_s14 = int_to_ptr.vmem [resolvable:$false] %s775_s14 }
  0x14   : > { %p773_p0 = pnand %p771_p13, %p759_p12  ;;  %s777_s15 = scalar_lea.vmem %s776_s14, 128 }
  0x15   : > { %p778_p2 = scmp.lt.s32.totalorder %s202_s9, %s776_s14  ;;  %p779_p3 = scmp.lt.s32.totalorder %s777_s15, %s770_s12 }
  0x16   : > { %p774_p1 = pneg %p773_p0 }
  0x17   : > { %p780_p4 = por %p779_p3, %p778_p2 }
  0x19   : > { %p781_p5 = pnand %p780_p4, %p774_p1 }
  0x1b   : > { %784 = shalt.err (!%p781_p5)
}
  0x1c   : > { %684 = dma.hbm_to_vmem [thread:$0]  (!%p930_p9), %s199_s7, 64, %s202_s9, %s191_s11  }
  0x1d   : > { %p214_p6 = pnand %p650_p10, %p213_p11 }
  0x1e   : > { %s219_s21 = sand.u32 (!%p214_p6), 1, %s819_s16  }
  0x1f   : > { %217 = sbr.rel (%p214_p6) target bundleno = 1243 (0x4db), region = 36  ;;  %s651_s23 = sshll.u32 (!%p214_p6), %s219_s21, 2 }
  0x20   : > { %s220_s24 = scalar_lea.sflag (!%p214_p6), [#allocation4], %s219_s21  ;;  %s223_s25 = scalar_lea.vmem (!%p214_p6), [#allocation3], %s651_s23 }
  0x24   : > { %810 = dma.done.wait (%p915_p7), %s220_s24, 64  }
  0x25   : > { %812 = vsyncadd (%p915_p7), %s220_s24, 4294967232  ;;  %p262_p8 = scmp.lt.s32.totalorder %s827_s18, 1  ;;  %v838_v0 = vmov 0.0   ;;  %vm839_vm0 = vmmov 0   ;;  %v840_v1 = vmov 0   ;;  %v745_v2 = vld [vmem:[%s1010_s1 + $0x8] sm:$0xff]   ;;  %v376_v6 = vlaneseq }
  0x26   : > { %671 = vmatprep.subr.bf16.mxu0 %v838_v0  ;;  %278 = vst [vmem:[#allocation2] sm:$0xff] %v838_v0  ;;  %675 = vmatprep.mubr.msk.bf16.mxu0 %vm839_vm0, %v838_v0  ;;  %v746_v3 = vld [vmem:[%s1010_s1] sm:$0xff]   ;;  %v285_v5 = vld [vmem:[%s223_s25] sm:$0xf]  ;;  %vm298_vm1 = vcmask 261120   ;;  %s659_s10 = sshll.u32 %s827_s18, 3 }
  0x27   : > { %744 = vset.pattern.permute.xlu1 %v840_v1  ;;  %s954_s28 = scalar_select %p262_p8, %s827_s18, 1  ;;  %743 = vset.pattern.permute.xlu0 %v840_v1  ;;  %v377_v7 = vshrl.u32 %v376_v6, 7  ;;  %v378_v8 = vstv %s659_s10  ;;  %v381_v10 = vand.u32 127, %v376_v6  ;;  %vm279_vm3 = vcmask 7168   ;;  %v658_v30 = vld [vmem:[%s1012_s3] ss:$0 sm:$0xff] }
  0x28   : > { %672 = vmatpush3.bf16.msra.mxu0 %v745_v2  ;;  %v841_v11 = vmov -inf   ;;  %s842_s12 = smov 1   ;;  %vm419_vm8 = vcmask 15368   ;;  %vm426_vm9 = vcmask 23568   ;;  %vm432_vm10 = vcmask 31768   ;;  %s843_s13 = smov 127  }
  0x29   : > { %s652_s26 = sshll.u32 %s954_s28, 3  ;;  %673 = vmatprep.subr.bf16.mxu0 %v838_v0  ;;  %v379_v9 = vadd.s32 %v378_v8, %v377_v7  ;;  %280 = vst.msk [vmem:[#allocation2] sm:$0xff] %vm279_vm3, %v841_v11  ;;  %vm384_vm4 = vcmp.lt.s32.totalorder %v381_v10, 16  ;;  %s844_s14 = smov 3  }
  0x2a   : > { %s265_s5 = scalar_lea.vmem %s1011_s2, %s652_s26  ;;  %s845_s15 = smov 2  }
  0x2b   : > { %v968_v4 = vld [vmem:[%s265_s5] sm:$0xff]  ;;  %vm385_vm2 = vcmp.ne.s32.totalorder %v379_v9, %v381_v10  ;;  %s846_s21 = smov 126   ;;  %s272_s25 = scalar_lea.vmem %s1013_s4, %s652_s26 }
  0x2c   : > { %355 = vperm.xlu1 %744, %v968_v4   ;;  %674 = vmatpush3.bf16.msra.mxu0 %v746_v3  ;;  %vm386_vm6 = vmand %vm384_vm4, %vm385_vm2  ;;  %vm510_vm12 = vcmp.eq.s32.totalorder %v968_v4, 0  ;;  %vm514_vm13 = vcmp.eq.s32.totalorder %v968_v4, 1 }
  0x2d   : > { %v661_v37 = vsel %vm386_vm6, 1.0, %v838_v0  ;;  %v664_v60 = vsel %vm510_vm12, 1.0, %v838_v0  ;;  %v665_v61 = vsel %vm514_vm13, 1.0, %v838_v0 }
  0x2e   : > { %v517_v1 = vadd.f32 %v665_v61, %v664_v60 }
  0x2f   : > { %676 = vmatmul.mubr.msk.bf16.vlgmr.msra.gmra.mxu0 %vm298_vm1, %v285_v5 }
  0x30   : > { %v362_v26 = vld [vmem:[#allocation2] sm:$0xff] }
  0xa7   : > { %v356_v31 = vpop.permute.xlu1 %355 }
  0xa8   : > { %vm361_vm5 = vcmp.eq.s32.totalorder %v356_v31, %v658_v30 }
  0xa9   : > { %vm402_vm7 = vmand %vm361_vm5, %vm386_vm6 }
  0xaa   : > { %v662_v32 = vsel %vm402_vm7, 1.0, %v838_v0 }
  0xef   : > { %v336_v12 = vpop.f32.mrf.mxu0 }
  0xf0   : > { %v342_v13 = vmul.f32 4.0, %v336_v12  ;;  %v348_v20 = vmul.f32 71.42857, %v336_v12 }
  0xf1   : > { %v677_v14 = vpop.f32.mrf.mxu0 }
  0xf2   : > { %v343_v15 = vsub.f32 5.0, %v342_v13  ;;  %v657_v22 = vadd.f32 -57.142857, %v348_v20 }
  0xf3   : > { %v339_v16 = vpop.f32.mrf.mxu0 }
  0xf4   : > { %747 = vrcp.f32 %v343_v15 }
  0xf5   : > { %v678_v17 = vpop.f32.mrf.mxu0 }
 0x101   : > { %v748_v18 = vpop.eup %747 }
 0x102   : > { %v345_v19 = vmul.f32 %v748_v18, %v343_v15 }
 0x104   : > { %v346_v21 = vsub.f32 2.0, %v345_v19 }
 0x106   : > { %v347_v23 = vmul.f32 %v748_v18, %v346_v21 }
 0x108   : > { %v350_v24 = vmul.f32 %v657_v22, %v347_v23 }
 0x10a   : > { %v387_v25 = vsel %vm384_vm4, %v350_v24, -inf  ;;  %v422_v33 = vmul.f32 %v662_v32, %v350_v24 }
 0x10b   : > { %388 = vmax.xlane.f32.xlu0 %v387_v25 }
 0x194   : > { %v389_v27 = vpop.xlane.xlu0 %388 }
 0x195   : > { %v390_v28 = vmax.f32 %v362_v26, %v389_v27 }
 0x197   : > { %v405_v29 = vsub.f32 %v362_v26, %v390_v28  ;;  %409 = vst.msk [vmem:[#allocation2] sm:$0xff] %vm279_vm3, %v390_v28  ;;  %393 = vperm.xlu0 %743, %v390_v28  }
 0x199   : > { %v406_v40 = vmul.f32 1.442695, %v405_v29 }
 0x19e   : > { %v410_v43 = vld [vmem:[#allocation2] sm:$0xff] }
 0x1b6   : > { %423 = vadd.xlane.f32.xlu0 %v422_v33 }
 0x212   : > { %v394_v34 = vpop.permute.xlu0 %393 }
 0x213   : > { %v396_v35 = vsub.f32 %v350_v24, %v394_v34 }
 0x215   : > { %v397_v36 = vmul.f32 1.442695, %v396_v35 }
 0x217   : > { %749 = vpow2.f32 %v397_v36 }
 0x218   : > { %751 = vpow2.f32 %v406_v40 }
 0x224   : > { %v750_v38 = vpop.eup %749 }
 0x225   : > { %v401_v39 = vmul.f32 %v750_v38, %v661_v37  ;;  %v752_v41 = vpop.eup %751 }
 0x227   : > { %416 = vadd.xlane.f32.xlu1 %v401_v39 }
 0x238   : > { %412 = vrot.lane.b32.xlu1 %v752_v41, %s842_s12 }
 0x23f   : > { %v424_v47 = vpop.xlane.xlu0 %423 }
 0x25c   : > { %429 = vadd.xlane.f32.xlu1 %v662_v32 }
 0x2b0   : > { %v417_v42 = vpop.xlane.xlu1 %416 }
 0x2b4   : > { %v413_v44 = vpop.permute.xlu1 %412 }
 0x2b5   : > { %v415_v45 = vmul.f32 %v413_v44, %v410_v43 }
 0x2b7   : > { %v418_v46 = vadd.f32 %v417_v42, %v415_v45 }
 0x2b9   : > { %420 = vst.msk [vmem:[#allocation2] sm:$0xff] %vm419_vm8, %v418_v46 }
 0x2c0   : > { %v421_v48 = vld [vmem:[#allocation2] sm:$0xff] }
 0x2c1   : > { %v425_v49 = vadd.f32 %v424_v47, %v421_v48 }
 0x2c3   : > { %427 = vst.msk [vmem:[#allocation2] sm:$0xff] %vm426_vm9, %v425_v49 }
 0x2ca   : > { %v428_v50 = vld [vmem:[#allocation2] sm:$0xff] }
 0x2e5   : > { %v430_v51 = vpop.xlane.xlu1 %429 }
 0x2e6   : > { %v431_v52 = vadd.f32 %v430_v51, %v428_v50 }
 0x2e8   : > { %433 = vst.msk [vmem:[#allocation2] sm:$0xff] %vm432_vm10, %v431_v52 }
 0x2ef   : > { %v482_v53 = vld [vmem:[#allocation2] sm:$0xff] }
 0x2f0   : > { %v485_v54 = vadd.f32 1e-06, %v482_v53  ;;  %vm483_vm11 = vcmp.lt.f32.partialorder %v482_v53, 1e-06 }
 0x2f1   : > { %v484_v57 = vsel %vm483_vm11, 1.0, %v482_v53 }
 0x2f2   : > { %753 = vlog2.f32 %v485_v54 }
 0x2ff   : > { %v754_v55 = vpop.eup %753 }
 0x300   : > { %v487_v56 = vmul.f32 0.6931472, %v754_v55 }
 0x302   : > { %489 = vrot.lane.b32.xlu0 %v487_v56, %s843_s13 }
 0x306   : > { %504 = vrot.lane.b32.xlu0 %v484_v57, %s843_s13 }
 0x374   : > { %v490_v58 = vpop.permute.xlu0 %489 }
 0x375   : > { %v492_v59 = vadd.f32 %v490_v58, %v482_v53 }
 0x377   : > { %494 = vrot.lane.b32.xlu1 %v492_v59, %s844_s14 }
 0x378   : > { %v505_v2 = vpop.permute.xlu0 %504 }
 0x379   : > { %755 = vrcp.f32 %v505_v2 }
 0x386   : > { %v756_v6 = vpop.eup %755 }
 0x3e9   : > { %v495_v62 = vpop.permute.xlu1 %494 }
 0x3ea   : > { %v497_v63 = vmul.f32 %v495_v62, %v482_v53 }
 0x3ec   : > { %499 = vrot.lane.b32.xlu0 %v497_v63, %s843_s13 }
 0x3f0   : > { %520 = vrot.lane.b32.xlu0 %v517_v1, %s845_s15 }
 0x45e   : > { %v500_v3 = vpop.permute.xlu0 %499 }
 0x45f   : > { %v502_v5 = vsub.f32 %v482_v53, %v500_v3 }
 0x461   : > { %v508_v7 = vmul.f32 %v756_v6, %v502_v5 }
 0x462   : > { %v521_v8 = vpop.permute.xlu0 %520 }
 0x463   : > { %v518_v9 = vmul.f32 -1.0, %v508_v7 }
 0x465   : > { %v523_v4 = vmul.f32 %v521_v8, %v518_v9 }
 0x467   : > { %525 = vrot.lane.b32.xlu1 %v523_v4, %s846_s21 }
 0x4d9   : > { %v526_v0 = vpop.permute.xlu1 %525 }
 0x4da   : > { %529 = vst.msk [vmem:[%s272_s25] sm:$0xff] %vm279_vm3, %v526_v0 }
 0x4db PF: > { %s17_s20 = sadd.s32 1, %s835_s20   ;;  %s1017_s15 = smov %s819_s16 }
 0x4dc   : > { %p14_p7 = scmp.ge.s32.totalorder %s17_s20, 4   ;;  %s1018_s16 = smov %s823_s17 }
 0x4dd   : > { %s1019_s17 = smov %s921_s27  ;;  %s1020_s18 = smov %s831_s19 }
 0x4de   : > { %s1021_s19 = smov %s1023_s22  ;;  %16 = sbr.rel (!%p14_p7) target bundleno = 4 (0x4), region = 101 }
 0x4e3   :  { %549 = vsyncpa [#allocation4], 1 }
 0x4e4   :  { %551 = vsyncpa [#allocation4 + $0x1], 1 }

</bundles_post_ra>
